<compile_context>
chip_gen: v7x
topology: tpu7x:2x2x1
jax: 0.10.0
libtpu: 0.0.40
codegen_flags: <defaults>
</compile_context>

<pallas_src>
import jax
import jax.numpy as jnp
from jax.experimental import pallas as pl
from jax.experimental.pallas import tpu as pltpu

INPUT_DIM = 25
OUTPUT_DIM = 15
H1, H2, H3 = 512, 256, 128

MAX_BLOCK_B = 1024  # safe on v5e (16 MiB scoped default) and well-amortized on v6e/v7x


def _round_up(n, m):
    return ((n + m - 1) // m) * m


def _choose_block_b(B):
    """Batch tile: multiple of 8 (or == B when B < 8), never larger than B,
    >= 2 grid steps for B > 256 (v7x megacore), balanced blocks, capped at MAX_BLOCK_B."""
    if B < 8:
        return B                      # block dim == full array dim satisfies sublane rule
    if B <= 256:
        return (B // 8) * 8           # single (or nearly single) block; tiny ragged tail if B % 8
    n_blocks = max(2, pl.cdiv(B, MAX_BLOCK_B))
    bb = _round_up(pl.cdiv(B, n_blocks), 8)
    return min(bb, (B // 8) * 8)


def _mlp_kernel(x_ref,
                w1_ref, b1_ref,
                w2_ref, b2_ref,
                w3_ref, b3_ref,
                w4_ref, b4_ref,
                o_ref):
    # fc1 + ReLU (dropout == identity in eval mode). Cast x -> bf16 in-kernel (MXU input),
    # accumulate f32; bias add / ReLU in f32 on the VPU (v5e has no bf16 VPU).
    x = x_ref[...].astype(jnp.bfloat16)
    h = jnp.dot(x, w1_ref[...], preferred_element_type=jnp.float32)
    h = jnp.maximum(h + b1_ref[...], 0.0)
    # fc2 + ReLU
    h = jnp.dot(h.astype(jnp.bfloat16), w2_ref[...], preferred_element_type=jnp.float32)
    h = jnp.maximum(h + b2_ref[...], 0.0)
    # fc3 + ReLU
    h = jnp.dot(h.astype(jnp.bfloat16), w3_ref[...], preferred_element_type=jnp.float32)
    h = jnp.maximum(h + b3_ref[...], 0.0)
    # fc4 (no activation); writes only the 15 real output columns.
    out = jnp.dot(h.astype(jnp.bfloat16), w4_ref[...], preferred_element_type=jnp.float32)
    o_ref[...] = (out + b4_ref[...]).astype(o_ref.dtype)


def _const_spec(shape):
    # Full-array block whose index_map is constant across the grid (weights/biases
    # stay resident in VMEM; only the x/out tiles move per grid step).
    ndim = len(shape)
    return pl.BlockSpec(shape, lambda i, _n=ndim: (0,) * _n)


def prepare_params(params):
    """Cast weights to bf16 for the MXU (run once); biases stay f32, shape (1, out)."""
    w1, b1, w2, b2, w3, b3, w4, b4 = params
    return (w1.astype(jnp.bfloat16), b1,
            w2.astype(jnp.bfloat16), b2,
            w3.astype(jnp.bfloat16), b3,
            w4.astype(jnp.bfloat16), b4)


@jax.jit
def ndis_forward(x, kernel_params):
    """Forward pass of NDISModel. x: (B, INPUT_DIM) float32, returns (B, OUTPUT_DIM) f32."""
    B = x.shape[0]
    w1, b1, w2, b2, w3, b3, w4, b4 = kernel_params

    block_b = _choose_block_b(B)
    grid = (pl.cdiv(B, block_b),)

    in_specs = [
        pl.BlockSpec((block_b, INPUT_DIM), lambda i: (i, 0)),
        _const_spec((INPUT_DIM, H1)), _const_spec((1, H1)),
        _const_spec((H1, H2)),        _const_spec((1, H2)),
        _const_spec((H2, H3)),        _const_spec((1, H3)),
        _const_spec((H3, OUTPUT_DIM)), _const_spec((1, OUTPUT_DIM)),
    ]
    out_specs = pl.BlockSpec((block_b, OUTPUT_DIM), lambda i: (i, 0))

    mac = INPUT_DIM * H1 + H1 * H2 + H2 * H3 + H3 * OUTPUT_DIM
    cost = pl.CostEstimate(
        flops=2 * B * mac,
        transcendentals=0,
        bytes_accessed=4 * B * (INPUT_DIM + OUTPUT_DIM)  # x in + out
        + 2 * mac                                        # bf16 weights
        + 4 * (H1 + H2 + H3 + OUTPUT_DIM),               # f32 biases
    )

    out = pl.pallas_call(
        _mlp_kernel,
        out_shape=jax.ShapeDtypeStruct((B, OUTPUT_DIM), jnp.float32),
        grid_spec=pltpu.PrefetchScalarGridSpec(
            num_scalar_prefetch=0,
            grid=grid,
            in_specs=in_specs,
            out_specs=out_specs,
        ),
        compiler_params=pltpu.CompilerParams(
            dimension_semantics=("parallel",),
        ),
        cost_estimate=cost,
    )(x, w1, b1, w2, b2, w3, b3, w4, b4)

    return out


def init_params(key):
    """Deterministic init mirroring nn.Linear default (uniform +/- 1/sqrt(fan_in)).

    Weights are stored as (in_features, out_features), i.e. transposed vs PyTorch.
    Biases are stored as (1, out_features) for clean 2-D broadcasting in-kernel.
    """
    dims = [(INPUT_DIM, H1), (H1, H2), (H2, H3), (H3, OUTPUT_DIM)]
    params = []
    for (fan_in, fan_out) in dims:
        key, kw, kb = jax.random.split(key, 3)
        bound = 1.0 / jnp.sqrt(float(fan_in))
        w = jax.random.uniform(kw, (fan_in, fan_out), jnp.float32, -bound, bound)
        b = jax.random.uniform(kb, (1, fan_out), jnp.float32, -bound, bound)
        params += [w, b]
    return tuple(params)


def reference_forward(x, params):
    w1, b1, w2, b2, w3, b3, w4, b4 = params
    h = jax.nn.relu(x @ w1 + b1)
    h = jax.nn.relu(h @ w2 + b2)
    h = jax.nn.relu(h @ w3 + b3)
    return h @ w4 + b4


if __name__ == "__main__":
    key = jax.random.PRNGKey(0)
    key, kx1, kx2 = jax.random.split(key, 3)

    params = init_params(key)
    kernel_params = prepare_params(params)

    # Small batch (single grid step).
    B_small = 8
    x_small = jax.random.normal(kx1, (B_small, INPUT_DIM), dtype=jnp.float32)
    out_small = jax.block_until_ready(ndis_forward(x_small, kernel_params))
    ref_small = reference_forward(x_small, params)
    assert out_small.shape == (B_small, OUTPUT_DIM), out_small.shape
    assert jnp.allclose(out_small, ref_small, atol=1e-2, rtol=1e-2), \
        "small-batch mismatch vs pure-JAX reference"

    # Larger, non-divisible batch: exercises 2-step grid + ragged last block.
    B_large = 600
    x_large = jax.random.normal(kx2, (B_large, INPUT_DIM), dtype=jnp.float32)
    out_large = jax.block_until_ready(ndis_forward(x_large, kernel_params))
    ref_large = reference_forward(x_large, params)
    assert out_large.shape == (B_large, OUTPUT_DIM), out_large.shape
    assert jnp.allclose(out_large, ref_large, atol=1e-2, rtol=1e-2), \
        "large-batch mismatch vs pure-JAX reference"

    print("KERNEL_OK")
</pallas_src>

<mosaic_0001>
module attributes {stable_mosaic.version = 11 : i64} {
  func.func @_mlp_kernel(%arg0: i32, %arg1: memref<8x25xf32, #tpu.memory_space<vmem>>, %arg2: memref<25x512xbf16, #tpu.memory_space<vmem>>, %arg3: memref<1x512xf32, #tpu.memory_space<vmem>>, %arg4: memref<512x256xbf16, #tpu.memory_space<vmem>>, %arg5: memref<1x256xf32, #tpu.memory_space<vmem>>, %arg6: memref<256x128xbf16, #tpu.memory_space<vmem>>, %arg7: memref<1x128xf32, #tpu.memory_space<vmem>>, %arg8: memref<128x15xbf16, #tpu.memory_space<vmem>>, %arg9: memref<1x15xf32, #tpu.memory_space<vmem>>, %arg10: memref<8x15xf32, #tpu.memory_space<vmem>>) attributes {dimension_semantics = [#tpu.dimension_semantics<parallel>], iteration_bounds = array<i64: 1>, scalar_prefetch = 0 : i64, scratch_operands = 0 : i64, tpu.core_type = #tpu.core_type<tc>, window_params = [{transform_indices = @transform_0, window_bounds = array<i64: 8, 25>}, {pipeline_mode = #tpu.pipeline_mode<synchronous>, transform_indices = @transform_1, window_bounds = array<i64: 25, 512>}, {pipeline_mode = #tpu.pipeline_mode<synchronous>, transform_indices = @transform_2, window_bounds = array<i64: 1, 512>}, {pipeline_mode = #tpu.pipeline_mode<synchronous>, transform_indices = @transform_3, window_bounds = array<i64: 512, 256>}, {pipeline_mode = #tpu.pipeline_mode<synchronous>, transform_indices = @transform_4, window_bounds = array<i64: 1, 256>}, {pipeline_mode = #tpu.pipeline_mode<synchronous>, transform_indices = @transform_5, window_bounds = array<i64: 256, 128>}, {pipeline_mode = #tpu.pipeline_mode<synchronous>, transform_indices = @transform_6, window_bounds = array<i64: 1, 128>}, {pipeline_mode = #tpu.pipeline_mode<synchronous>, transform_indices = @transform_7, window_bounds = array<i64: 128, 15>}, {pipeline_mode = #tpu.pipeline_mode<synchronous>, transform_indices = @transform_8, window_bounds = array<i64: 1, 15>}, {transform_indices = @transform_9, window_bounds = array<i64: 8, 15>}]} {
    %c0 = arith.constant 0 : index
    %c0_0 = arith.constant 0 : index
    %0 = vector.load %arg1[%c0, %c0_0] : memref<8x25xf32, #tpu.memory_space<vmem>>, vector<8x25xf32>
    %1 = arith.truncf %0 : vector<8x25xf32> to vector<8x25xbf16>
    %c0_1 = arith.constant 0 : index
    %c0_2 = arith.constant 0 : index
    %2 = vector.load %arg2[%c0_1, %c0_2] : memref<25x512xbf16, #tpu.memory_space<vmem>>, vector<25x512xbf16>
    %cst = arith.constant dense<0.000000e+00> : vector<8x512xf32>
    %3 = tpu.matmul %1, %2, %cst {dimension_numbers = #tpu.dot_dimension_numbers<[1], [0], [0], [1], [0, 0, 1, 1], [], []>} : vector<8x25xbf16>, vector<25x512xbf16>, vector<8x512xf32> -> vector<8x512xf32>
    %c0_3 = arith.constant 0 : index
    %c0_4 = arith.constant 0 : index
    %4 = vector.load %arg3[%c0_3, %c0_4] : memref<1x512xf32, #tpu.memory_space<vmem>>, vector<1x512xf32>
    %5 = vector.broadcast %4 : vector<1x512xf32> to vector<8x512xf32>
    %6 = arith.addf %3, %5 : vector<8x512xf32>
    %cst_5 = arith.constant 0.000000e+00 : f32
    %7 = vector.broadcast %cst_5 : f32 to vector<8x512xf32>
    %8 = arith.maximumf %6, %7 : vector<8x512xf32>
    %9 = arith.truncf %8 : vector<8x512xf32> to vector<8x512xbf16>
    %c0_6 = arith.constant 0 : index
    %c0_7 = arith.constant 0 : index
    %10 = vector.load %arg4[%c0_6, %c0_7] : memref<512x256xbf16, #tpu.memory_space<vmem>>, vector<512x256xbf16>
    %cst_8 = arith.constant dense<0.000000e+00> : vector<8x256xf32>
    %11 = tpu.matmul %9, %10, %cst_8 {dimension_numbers = #tpu.dot_dimension_numbers<[1], [0], [0], [1], [0, 0, 1, 1], [], []>} : vector<8x512xbf16>, vector<512x256xbf16>, vector<8x256xf32> -> vector<8x256xf32>
    %c0_9 = arith.constant 0 : index
    %c0_10 = arith.constant 0 : index
    %12 = vector.load %arg5[%c0_9, %c0_10] : memref<1x256xf32, #tpu.memory_space<vmem>>, vector<1x256xf32>
    %13 = vector.broadcast %12 : vector<1x256xf32> to vector<8x256xf32>
    %14 = arith.addf %11, %13 : vector<8x256xf32>
    %cst_11 = arith.constant 0.000000e+00 : f32
    %15 = vector.broadcast %cst_11 : f32 to vector<8x256xf32>
    %16 = arith.maximumf %14, %15 : vector<8x256xf32>
    %17 = arith.truncf %16 : vector<8x256xf32> to vector<8x256xbf16>
    %c0_12 = arith.constant 0 : index
    %c0_13 = arith.constant 0 : index
    %18 = vector.load %arg6[%c0_12, %c0_13] : memref<256x128xbf16, #tpu.memory_space<vmem>>, vector<256x128xbf16>
    %cst_14 = arith.constant dense<0.000000e+00> : vector<8x128xf32>
    %19 = tpu.matmul %17, %18, %cst_14 {dimension_numbers = #tpu.dot_dimension_numbers<[1], [0], [0], [1], [0, 0, 1, 1], [], []>} : vector<8x256xbf16>, vector<256x128xbf16>, vector<8x128xf32> -> vector<8x128xf32>
    %c0_15 = arith.constant 0 : index
    %c0_16 = arith.constant 0 : index
    %20 = vector.load %arg7[%c0_15, %c0_16] : memref<1x128xf32, #tpu.memory_space<vmem>>, vector<1x128xf32>
    %21 = vector.broadcast %20 : vector<1x128xf32> to vector<8x128xf32>
    %22 = arith.addf %19, %21 : vector<8x128xf32>
    %cst_17 = arith.constant 0.000000e+00 : f32
    %23 = vector.broadcast %cst_17 : f32 to vector<8x128xf32>
    %24 = arith.maximumf %22, %23 : vector<8x128xf32>
    %25 = arith.truncf %24 : vector<8x128xf32> to vector<8x128xbf16>
    %c0_18 = arith.constant 0 : index
    %c0_19 = arith.constant 0 : index
    %26 = vector.load %arg8[%c0_18, %c0_19] : memref<128x15xbf16, #tpu.memory_space<vmem>>, vector<128x15xbf16>
    %cst_20 = arith.constant dense<0.000000e+00> : vector<8x15xf32>
    %27 = tpu.matmul %25, %26, %cst_20 {dimension_numbers = #tpu.dot_dimension_numbers<[1], [0], [0], [1], [0, 0, 1, 1], [], []>} : vector<8x128xbf16>, vector<128x15xbf16>, vector<8x15xf32> -> vector<8x15xf32>
    %c0_21 = arith.constant 0 : index
    %c0_22 = arith.constant 0 : index
    %28 = vector.load %arg9[%c0_21, %c0_22] : memref<1x15xf32, #tpu.memory_space<vmem>>, vector<1x15xf32>
    %29 = vector.broadcast %28 : vector<1x15xf32> to vector<8x15xf32>
    %30 = arith.addf %27, %29 : vector<8x15xf32>
    %c0_23 = arith.constant 0 : index
    %c0_24 = arith.constant 0 : index
    %31 = vector.load %arg10[%c0_23, %c0_24] : memref<8x15xf32, #tpu.memory_space<vmem>>, vector<8x15xf32>
    tpu.vector_store %arg10[%c0_23, %c0_24], %30 {strides = array<i32>} : memref<8x15xf32, #tpu.memory_space<vmem>>, vector<8x15xf32>,
    return
  }
  func.func @transform_0(%arg0: i32) -> (i32, i32) {
    %c0_i32 = arith.constant 0 : i32
    %c0_i32_0 = arith.constant 0 : i32
    return %arg0, %c0_i32 : i32, i32
  }
  func.func @transform_1(%arg0: i32) -> (i32, i32) {
    %c0_i32 = arith.constant 0 : i32
    %c0_i32_0 = arith.constant 0 : i32
    %c0_i32_1 = arith.constant 0 : i32
    return %c0_i32, %c0_i32_0 : i32, i32
  }
  func.func @transform_2(%arg0: i32) -> (i32, i32) {
    %c0_i32 = arith.constant 0 : i32
    %c0_i32_0 = arith.constant 0 : i32
    %c0_i32_1 = arith.constant 0 : i32
    return %c0_i32, %c0_i32_0 : i32, i32
  }
  func.func @transform_3(%arg0: i32) -> (i32, i32) {
    %c0_i32 = arith.constant 0 : i32
    %c0_i32_0 = arith.constant 0 : i32
    %c0_i32_1 = arith.constant 0 : i32
    return %c0_i32, %c0_i32_0 : i32, i32
  }
  func.func @transform_4(%arg0: i32) -> (i32, i32) {
    %c0_i32 = arith.constant 0 : i32
    %c0_i32_0 = arith.constant 0 : i32
    %c0_i32_1 = arith.constant 0 : i32
    return %c0_i32, %c0_i32_0 : i32, i32
  }
  func.func @transform_5(%arg0: i32) -> (i32, i32) {
    %c0_i32 = arith.constant 0 : i32
    %c0_i32_0 = arith.constant 0 : i32
    %c0_i32_1 = arith.constant 0 : i32
    return %c0_i32, %c0_i32_0 : i32, i32
  }
  func.func @transform_6(%arg0: i32) -> (i32, i32) {
    %c0_i32 = arith.constant 0 : i32
    %c0_i32_0 = arith.constant 0 : i32
    %c0_i32_1 = arith.constant 0 : i32
    return %c0_i32, %c0_i32_0 : i32, i32
  }
  func.func @transform_7(%arg0: i32) -> (i32, i32) {
    %c0_i32 = arith.constant 0 : i32
    %c0_i32_0 = arith.constant 0 : i32
    %c0_i32_1 = arith.constant 0 : i32
    return %c0_i32, %c0_i32_0 : i32, i32
  }
  func.func @transform_8(%arg0: i32) -> (i32, i32) {
    %c0_i32 = arith.constant 0 : i32
    %c0_i32_0 = arith.constant 0 : i32
    %c0_i32_1 = arith.constant 0 : i32
    return %c0_i32, %c0_i32_0 : i32, i32
  }
  func.func @transform_9(%arg0: i32) -> (i32, i32) {
    %c0_i32 = arith.constant 0 : i32
    %c0_i32_0 = arith.constant 0 : i32
    return %arg0, %c0_i32 : i32, i32
  }
}

</mosaic_0001>

<bundles_post_ra>
// kernel: ndis_forward.1
= control target key start
LH: loop header
LB: loop body
LE: loop exit
PB: predicated region body
PF: predicated region fallthrough
CT: control target
= control target key end

     0   :  { %14 = vsyncpa [#allocation3], 0  ;;  %s1585_s0 = inlined_call_operand.vmem [shape: f32[8,25], index: 0, kind: input, shape index: {}]   ;;  %s1586_s1 = inlined_call_operand.vmem [shape: bf16[25,512], index: 1, kind: input, shape index: {}]   ;;  %s1587_s2 = inlined_call_operand.vmem [shape: f32[1,512], index: 2, kind: input, shape index: {}]   ;;  %s1588_s3 = inlined_call_operand.hbm [shape: bf16[512,256], index: 3, kind: input, shape index: {}]   ;;  %s1589_s4 = inlined_call_operand.vmem [shape: f32[1,256], index: 4, kind: input, shape index: {}]   ;;  %s1590_s5 = inlined_call_operand.hbm [shape: bf16[256,128], index: 5, kind: input, shape index: {}]   ;;  %s1591_s6 = inlined_call_operand.vmem [shape: f32[1,128], index: 6, kind: input, shape index: {}]   ;;  %s1592_s7 = inlined_call_operand.vmem [shape: bf16[128,15], index: 7, kind: input, shape index: {}]   ;;  %s1593_s8 = inlined_call_operand.vmem [shape: f32[1,15], index: 8, kind: input, shape index: {}]   ;;  %s1594_s9 = inlined_call_operand.hbm [shape: f32[8,15], index: 9, kind: output, shape index: {}]  }
   0x1   :  { %15 = vsyncpa [#allocation6], 0 }
   0x2   :  { %16 = vsyncpa [#allocation4], 0  ;;  %s1400_s30 = smov [#allocation2]   ;;  %s1328_s13 = scalar_lea.hbm %s1588_s3, 8192 }
   0x3   :  { %s28_s10 = sshll.u32 %s1400_s30, 4  ;;  %p1329_p0 = scmp.ne.s32.totalorder %s1588_s3, %s1328_s13  ;;  %s29_s10 = int_to_ptr.vmem [resolvable:$true] %s28_s10 }
   0x4   :  { %p1332_p1 = scmp.lt.u32.totalorder %s1328_s13, %s1588_s3 }
   0x6   :  { %p1334_p2 = pnand %p1332_p1, %p1329_p0 }
   0x8   :  { %1337 = shalt.err (!%p1334_p2)
}
   0x9   :  { %s1338_s18 = scalar_lea.vmem %s29_s10, 8192  ;;  %p1343_p4 = scmp.lt.s32.totalorder %s29_s10, %s29_s10 }
   0xa   :  { %p1339_p3 = scmp.ne.s32.totalorder %s29_s10, %s1338_s18  ;;  %p1344_p5 = scmp.lt.s32.totalorder %s1338_s18, %s1338_s18 }
   0xc   :  { %p1345_p6 = por %p1344_p5, %p1343_p4 }
   0xe   :  { %p1346_p7 = pnand %p1345_p6, %p1339_p3 }
  0x10   :  { %1349 = shalt.err (!%p1346_p7)
}
  0x11   :  { %s1401_s19 = smov 128   ;;  %s1402_s20 = smov 8  }
  0x12   :  { %34 = dma.hbm_to_vmem [thread:$0]  %s1588_s3, 8192, %s29_s10, [#allocation3], %s1401_s19, %s1401_s19, %s1402_s20  }
  0x13   :  { %s1403_s23 = smov [#allocation5]   ;;  %s1350_s27 = scalar_lea.hbm %s1590_s5, 2048 }
  0x14   :  { %s42_s24 = sshll.u32 %s1403_s23, 4  ;;  %p1351_p8 = scmp.ne.s32.totalorder %s1590_s5, %s1350_s27  ;;  %s43_s24 = int_to_ptr.vmem [resolvable:$true] %s42_s24 }
  0x15   :  { %p1354_p9 = scmp.lt.u32.totalorder %s1350_s27, %s1590_s5 }
  0x17   :  { %p1356_p10 = pnand %p1354_p9, %p1351_p8 }
  0x19   :  { %1359 = shalt.err (!%p1356_p10)
}
  0x1a   :  { %s1360_s12 = scalar_lea.vmem %s43_s24, 2048  ;;  %p1365_p12 = scmp.lt.s32.totalorder %s43_s24, %s43_s24 }
  0x1b   :  { %p1361_p11 = scmp.ne.s32.totalorder %s43_s24, %s1360_s12  ;;  %p1366_p13 = scmp.lt.s32.totalorder %s1360_s12, %s1360_s12 }
  0x1d   :  { %p1367_p0 = por %p1366_p13, %p1365_p12 }
  0x1f   :  { %p1368_p1 = pnand %p1367_p0, %p1361_p11 }
  0x21   :  { %1371 = shalt.err (!%p1368_p1)
}
  0x22   :  { %s1404_s3 = smov 64   ;;  %s1405_s10 = smov 4  }
  0x23   :  { %48 = dma.hbm_to_vmem [thread:$0]  %s1590_s5, 2048, %s43_s24, [#allocation6], %s1404_s3, %s1404_s3, %s1405_s10  }
  0x24   :  { %1394 = dma.done.wait [#allocation3], 8192  }
  0x25   :  { %1395 = vsyncadd [#allocation3], 4294959104 }
  0x26   :  { %1396 = dma.done.wait [#allocation6], 2048  }
  0x27   :  { %1397 = vsyncadd [#allocation6], 4294965248  ;;  %v1406_v0 = vmov 0   ;;  %vm134_vm0 = vcmask 1043456   ;;  %vm135_vm1 = vcmask 1044480   ;;  %v1407_v1 = vmov 65535  }
  0x28   :  { %182 = vmatprep.mubr.bf16.mxu1 %v1406_v0  ;;  %v136_v2 = vsel %vm134_vm0, 4294967295, %v1407_v1  ;;  %v1196_v3 = vld [vmem:[%s1586_s1 + $0x4] ss:$16 sps:$4 sm:$0xff]   ;;  %v1198_v4 = vld [vmem:[%s1586_s1] ss:$16 sps:$4 sm:$0xff]   ;;  %vm130_vm2 = vcmask 203776   ;;  %v74_v63 = vlaneseq }
  0x29   :  { %v137_v5 = vsel %vm135_vm1, %v136_v2, 0  ;;  %150 = vmatprep.subr.bf16.mxu1 %v1196_v3  ;;  %v1199_v6 = vld [vmem:[%s1586_s1 + $0x24] ss:$16 sps:$4 sm:$0x1f]   ;;  %v1204_v11 = vld [vmem:[%s1586_s1 + $0xc] ss:$16 sps:$4 sm:$0xff]  }
  0x2a   :  { %v1201_v7 = vld [vmem:[%s1586_s1 + $0x20] ss:$16 sps:$4 sm:$0x1f]   ;;  %151 = vmatpush1.bf16.msra.mxu1 %v1198_v4  ;;  %v142_v9 = vand.u32 %v1199_v6, %v137_v5  ;;  %v1202_v12 = vld [vmem:[%s1586_s1 + $0x8] ss:$16 sps:$4 sm:$0xff]   ;;  %vm1409_vm3 = vmmov 0  }
  0x2b   :  { %v62_v8 = vld [vmem:[%s1585_s0] sm:$0xff]  ;;  %v139_v10 = vand.u32 %v1201_v7, %v137_v5  ;;  %v1205_v13 = vld [vmem:[%s1586_s1 + $0x28] ss:$16 sps:$4 sm:$0x1f]   ;;  %v1211_v19 = vld [vmem:[#allocation2 + $0x14] ss:$8 sps:$4 sm:$0xff]  }
  0x2c   :  { %152 = vmatprep.subr.bf16.mxu1 %v142_v9  ;;  %v63_v14 = vpack.c.bf16 %v62_v8, %v62_v8  ;;  %v1207_v15 = vld [vmem:[%s1586_s1 + $0x2c] ss:$16 sps:$4 sm:$0x1f]   ;;  %v1210_v17 = vld [vmem:[#allocation2] ss:$8 sps:$4 sm:$0xff]   ;;  %v145_v22 = vand.u32 %v1205_v13, %v137_v5  ;;  %v1308_v55 = vld [vmem:[#allocation5 + $0x50] sm:$0xff]  }
  0x2d   :  { %v1208_v16 = vld [vmem:[#allocation2 + $0x4] ss:$8 sps:$4 sm:$0xff]   ;;  %v148_v18 = vand.u32 %v1207_v15, %v137_v5  ;;  %v1213_v20 = vld [vmem:[#allocation2 + $0x10] ss:$8 sps:$4 sm:$0xff]   ;;  %v1216_v23 = vld [vmem:[#allocation2 + $0x20] ss:$8 sps:$4 sm:$0xff]  }
  0x2e   :  { %153 = vmatpush1.bf16.msra.mxu1 %v139_v10  ;;  %636 = vmatprep.subr.bf16.mxu0 %v1208_v16  ;;  %v1214_v21 = vld [vmem:[#allocation2 + $0x24] ss:$8 sps:$4 sm:$0xff]   ;;  %v1217_v24 = vld [vmem:[#allocation2 + $0x34] ss:$8 sps:$4 sm:$0xff]   ;;  %v1219_v25 = vld [vmem:[#allocation2 + $0x30] ss:$8 sps:$4 sm:$0xff]  }
  0x2f   :  { %191 = vmatprep.subr.bf16.mxu1 %v1204_v11  ;;  %637 = vmatpush1.bf16.msra.mxu0 %v1210_v17  ;;  %v1220_v26 = vld [vmem:[#allocation2 + $0x44] ss:$8 sps:$4 sm:$0xff]   ;;  %v1222_v27 = vld [vmem:[#allocation2 + $0x40] ss:$8 sps:$4 sm:$0xff]   ;;  %v1223_v28 = vld [vmem:[#allocation2 + $0x54] ss:$8 sps:$4 sm:$0xff]  }
  0x30   :  { %638 = vmatprep.subr.bf16.mxu0 %v1211_v19  ;;  %v1225_v29 = vld [vmem:[#allocation2 + $0x50] ss:$8 sps:$4 sm:$0xff]   ;;  %v1226_v30 = vld [vmem:[#allocation2 + $0x64] ss:$8 sps:$4 sm:$0xff]   ;;  %v1228_v31 = vld [vmem:[#allocation2 + $0x60] ss:$8 sps:$4 sm:$0xff]  }
  0x31   :  { %1036 = vmatmul.mubr.msk.bf16.vlgmr.msra.gmra.mrb[0].mxu1 %vm130_vm2, %v63_v14  ;;  %v1229_v32 = vld [vmem:[#allocation2 + $0x74] ss:$8 sps:$4 sm:$0xff]   ;;  %v1231_v33 = vld [vmem:[#allocation2 + $0x70] ss:$8 sps:$4 sm:$0xff]   ;;  %v1232_v34 = vld [vmem:[#allocation2 + $0x84] ss:$8 sps:$4 sm:$0xff]  }
  0x32   :  { %192 = vmatpush1.bf16.msra.mxu1 %v1202_v12  ;;  %223 = vmatprep.mubr.bf16.mxu1 %v1406_v0  ;;  %v1234_v35 = vld [vmem:[#allocation2 + $0x80] ss:$8 sps:$4 sm:$0xff]   ;;  %v1235_v36 = vld [vmem:[#allocation2 + $0x94] ss:$8 sps:$4 sm:$0xff]   ;;  %v1237_v37 = vld [vmem:[#allocation2 + $0x90] ss:$8 sps:$4 sm:$0xff]  }
  0x33   :  { %193 = vmatprep.subr.bf16.mxu1 %v148_v18  ;;  %639 = vmatpush1.bf16.msra.mxu0 %v1213_v20  ;;  %v1238_v38 = vld [vmem:[#allocation2 + $0xa4] ss:$8 sps:$4 sm:$0xff]   ;;  %v1240_v39 = vld [vmem:[#allocation2 + $0xa0] ss:$8 sps:$4 sm:$0xff]   ;;  %v1241_v40 = vld [vmem:[#allocation2 + $0xb4] ss:$8 sps:$4 sm:$0xff]  }
  0x34   :  { %640 = vmatprep.subr.bf16.mxu0 %v1214_v21  ;;  %v1243_v41 = vld [vmem:[#allocation2 + $0xb0] ss:$8 sps:$4 sm:$0xff]   ;;  %v1244_v42 = vld [vmem:[#allocation2 + $0xc4] ss:$8 sps:$4 sm:$0xff]   ;;  %v1246_v43 = vld [vmem:[#allocation2 + $0xc0] ss:$8 sps:$4 sm:$0xff]  }
  0x35   :  { %v1247_v44 = vld [vmem:[#allocation2 + $0xd4] ss:$8 sps:$4 sm:$0xff]   ;;  %v1249_v45 = vld [vmem:[#allocation2 + $0xd0] ss:$8 sps:$4 sm:$0xff]   ;;  %v1250_v46 = vld [vmem:[#allocation2 + $0xe4] ss:$8 sps:$4 sm:$0xff]  }
  0x36   :  { %194 = vmatpush1.bf16.msra.mxu1 %v145_v22  ;;  %v1252_v47 = vld [vmem:[#allocation2 + $0xe0] ss:$8 sps:$4 sm:$0xff]   ;;  %v1253_v48 = vld [vmem:[#allocation2 + $0xf4] ss:$8 sps:$4 sm:$0xff]   ;;  %v1255_v49 = vld [vmem:[#allocation2 + $0xf0] ss:$8 sps:$4 sm:$0xff]  }
  0x37   :  { %641 = vmatpush1.bf16.msra.mxu0 %v1216_v23  ;;  %v1258_v50 = vld [vmem:[#allocation2 + $0x104] ss:$8 sps:$4 sm:$0xff]   ;;  %v1309_v56 = vld [vmem:[#allocation5 + $0x10] sm:$0xff]   ;;  %v1310_v57 = vld [vmem:[#allocation5 + $0x58] sm:$0xff]   ;;  %v1514_v0 = vshrl.u32 %v74_v63, 7  ;;  %vm1010_vm4 = vcmask 121856  }
  0x38   :  { %642 = vmatprep.subr.bf16.mxu0 %v1217_v24  ;;  %v1304_v51 = vld [vmem:[#allocation5 + $0x40] sm:$0xff]   ;;  %v1306_v53 = vld [vmem:[#allocation5 + $0x48] sm:$0xff]   ;;  %v1311_v58 = vld [vmem:[#allocation5 + $0x18] sm:$0xff]  }
  0x39   :  { %1037 = vmatmul.mubr.msk.bf16.vlgmr.msra.gmra.mrb[4].mxu1 %vm130_vm2, %v63_v14  ;;  %v1305_v52 = vld [vmem:[#allocation5] sm:$0xff]   ;;  %1128 = vmatprep.subr.bf16.mxu1 %v1304_v51  ;;  %v1307_v54 = vld [vmem:[#allocation5 + $0x8] sm:$0xff]   ;;  %v76_v1 = vsub.s32 0, %v1514_v0  ;;  %v80_v3 = vsub.s32 1, %v1514_v0  ;;  %v88_v11 = vsub.s32 3, %v1514_v0  ;;  %v1318_v63 = vld [vmem:[#allocation5 + $0x78] sm:$0xff]  }
  0x3a   :  { %1129 = vmatpush3.bf16.msra.mxu1 %v1305_v52  ;;  %v1312_v59 = vld [vmem:[#allocation5 + $0x60] sm:$0xff]   ;;  %v1314_v61 = vld [vmem:[#allocation5 + $0x68] sm:$0xff]   ;;  %v1261_v19 = vld [vmem:[#allocation2 + $0x114] ss:$8 sps:$4 sm:$0xff]  }
  0x3b   :  { %643 = vmatpush1.bf16.msra.mxu0 %v1219_v25  ;;  %1130 = vmatprep.subr.bf16.mxu1 %v1306_v53  ;;  %v1313_v60 = vld [vmem:[#allocation5 + $0x20] sm:$0xff]   ;;  %v1315_v62 = vld [vmem:[#allocation5 + $0x28] sm:$0xff]   ;;  %v1259_v22 = vld [vmem:[#allocation2 + $0x110] ss:$8 sps:$4 sm:$0xff]  }
  0x3c   :  { %644 = vmatprep.subr.bf16.mxu0 %v1220_v26  ;;  %v1520_v2 = vld [vmem:[%s1587_s2] sm:$0xf]  ;;  %v1264_v25 = vld [vmem:[#allocation2 + $0x124] ss:$8 sps:$4 sm:$0xff]   ;;  %v1297_v51 = vld [vmem:[#allocation2 + $0x1d4] ss:$8 sps:$4 sm:$0xff]  }
  0x3d   :  { %v77_v4 = vrot.slane %v1520_v2, %v76_v1  ;;  %v81_v5 = vrot.slane %v1520_v2, %v80_v3  ;;  %v1256_v16 = vld [vmem:[#allocation2 + $0x100] ss:$8 sps:$4 sm:$0xff]   ;;  %v89_v17 = vrot.slane %v1520_v2, %v88_v11  ;;  %v1295_v52 = vld [vmem:[#allocation2 + $0x1d0] ss:$8 sps:$4 sm:$0xff]  }
  0x3e   :  { %1131 = vmatpush3.bf16.msra.mxu1 %v1307_v54  ;;  %v1300_v54 = vld [vmem:[#allocation2 + $0x1e4] ss:$8 sps:$4 sm:$0xff]  }
  0x3f   :  { %645 = vmatpush1.bf16.msra.mxu0 %v1222_v27  ;;  %1132 = vmatprep.subr.bf16.mxu1 %v1308_v55  ;;  %v1298_v55 = vld [vmem:[#allocation2 + $0x1e0] ss:$8 sps:$4 sm:$0xff]  }
  0x40   :  { %646 = vmatprep.subr.bf16.mxu0 %v1223_v28  ;;  %v1262_v28 = vld [vmem:[#allocation2 + $0x120] ss:$8 sps:$4 sm:$0xff]  }
  0x42   :  { %1133 = vmatpush3.bf16.msra.mxu1 %v1309_v56 }
  0x43   :  { %647 = vmatpush1.bf16.msra.mxu0 %v1225_v29  ;;  %1134 = vmatprep.subr.bf16.mxu1 %v1310_v57  ;;  %v1303_v57 = vld [vmem:[#allocation2 + $0x1f4] ss:$8 sps:$4 sm:$0xff]  }
  0x44   :  { %648 = vmatprep.subr.bf16.mxu0 %v1226_v30  ;;  %v1267_v30 = vld [vmem:[#allocation2 + $0x134] ss:$8 sps:$4 sm:$0xff]  }
  0x46   :  { %1135 = vmatpush3.bf16.msra.mxu1 %v1311_v58  ;;  %v1301_v58 = vld [vmem:[#allocation2 + $0x1f0] ss:$8 sps:$4 sm:$0xff]  }
  0x47   :  { %649 = vmatpush1.bf16.msra.mxu0 %v1228_v31  ;;  %1136 = vmatprep.subr.bf16.mxu1 %v1312_v59  ;;  %v1265_v31 = vld [vmem:[#allocation2 + $0x130] ss:$8 sps:$4 sm:$0xff]  }
  0x48   :  { %650 = vmatprep.subr.bf16.mxu0 %v1229_v32  ;;  %v1270_v32 = vld [vmem:[#allocation2 + $0x144] ss:$8 sps:$4 sm:$0xff]  }
  0x4a   :  { %1137 = vmatpush3.bf16.msra.mxu1 %v1313_v60 }
  0x4b   :  { %651 = vmatpush1.bf16.msra.mxu0 %v1231_v33  ;;  %1138 = vmatprep.subr.bf16.mxu1 %v1314_v61  ;;  %v1268_v33 = vld [vmem:[#allocation2 + $0x140] ss:$8 sps:$4 sm:$0xff]   ;;  %v1316_v61 = vld [vmem:[#allocation5 + $0x70] sm:$0xff]  }
  0x4c   :  { %652 = vmatprep.subr.bf16.mxu0 %v1232_v34  ;;  %v1273_v34 = vld [vmem:[#allocation2 + $0x154] ss:$8 sps:$4 sm:$0xff]  }
  0x4e   :  { %1139 = vmatpush3.bf16.msra.mxu1 %v1315_v62  ;;  %v1317_v62 = vld [vmem:[#allocation5 + $0x30] sm:$0xff]  }
  0x4f   :  { %653 = vmatpush1.bf16.msra.mxu0 %v1234_v35  ;;  %v1271_v35 = vld [vmem:[#allocation2 + $0x150] ss:$8 sps:$4 sm:$0xff]   ;;  %1140 = vmatprep.subr.bf16.mxu1 %v1316_v61 }
  0x50   :  { %654 = vmatprep.subr.bf16.mxu0 %v1235_v36  ;;  %v1276_v36 = vld [vmem:[#allocation2 + $0x164] ss:$8 sps:$4 sm:$0xff]  }
  0x52   :  { %1141 = vmatpush3.bf16.msra.mxu1 %v1317_v62 }
  0x53   :  { %655 = vmatpush1.bf16.msra.mxu0 %v1237_v37  ;;  %v1274_v37 = vld [vmem:[#allocation2 + $0x160] ss:$8 sps:$4 sm:$0xff]   ;;  %1142 = vmatprep.subr.bf16.mxu1 %v1318_v63 }
  0x54   :  { %656 = vmatprep.subr.bf16.mxu0 %v1238_v38  ;;  %v1279_v38 = vld [vmem:[#allocation2 + $0x174] ss:$8 sps:$4 sm:$0xff]  }
  0x57   :  { %657 = vmatpush1.bf16.msra.mxu0 %v1240_v39  ;;  %v1277_v39 = vld [vmem:[#allocation2 + $0x170] ss:$8 sps:$4 sm:$0xff]  }
  0x58   :  { %658 = vmatprep.subr.bf16.mxu0 %v1241_v40  ;;  %v1282_v40 = vld [vmem:[#allocation2 + $0x184] ss:$8 sps:$4 sm:$0xff]  }
  0x5b   :  { %659 = vmatpush1.bf16.msra.mxu0 %v1243_v41  ;;  %v1280_v41 = vld [vmem:[#allocation2 + $0x180] ss:$8 sps:$4 sm:$0xff]  }
  0x5c   :  { %660 = vmatprep.subr.bf16.mxu0 %v1244_v42  ;;  %v1285_v42 = vld [vmem:[#allocation2 + $0x194] ss:$8 sps:$4 sm:$0xff]  }
  0x5f   :  { %661 = vmatpush1.bf16.msra.mxu0 %v1246_v43  ;;  %v1283_v43 = vld [vmem:[#allocation2 + $0x190] ss:$8 sps:$4 sm:$0xff]  }
  0x60   :  { %662 = vmatprep.subr.bf16.mxu0 %v1247_v44  ;;  %v1288_v44 = vld [vmem:[#allocation2 + $0x1a4] ss:$8 sps:$4 sm:$0xff]  }
  0x63   :  { %663 = vmatpush1.bf16.msra.mxu0 %v1249_v45  ;;  %v1286_v45 = vld [vmem:[#allocation2 + $0x1a0] ss:$8 sps:$4 sm:$0xff]  }
  0x64   :  { %664 = vmatprep.subr.bf16.mxu0 %v1250_v46  ;;  %v1291_v46 = vld [vmem:[#allocation2 + $0x1b4] ss:$8 sps:$4 sm:$0xff]  }
  0x67   :  { %665 = vmatpush1.bf16.msra.mxu0 %v1252_v47  ;;  %v1289_v47 = vld [vmem:[#allocation2 + $0x1b0] ss:$8 sps:$4 sm:$0xff]  }
  0x68   :  { %666 = vmatprep.subr.bf16.mxu0 %v1253_v48  ;;  %v1294_v48 = vld [vmem:[#allocation2 + $0x1c4] ss:$8 sps:$4 sm:$0xff]  }
  0x6b   :  { %667 = vmatpush1.bf16.msra.mxu0 %v1255_v49  ;;  %v1292_v49 = vld [vmem:[#allocation2 + $0x1c0] ss:$8 sps:$4 sm:$0xff]  }
  0x6c   :  { %677 = vmatprep.subr.bf16.mxu0 %v1258_v50  ;;  %v84_v50 = vsub.s32 2, %v1514_v0  ;;  %v1321_v0 = vld [vmem:[%s1592_s7 + $0x8] sm:$0xff]  }
  0x6e   :  { %v85_v53 = vrot.slane %v1520_v2, %v84_v50  ;;  %v1319_v2 = vld [vmem:[#allocation5 + $0x38] sm:$0xff]  }
  0x6f   :  { %1143 = vmatpush3.bf16.msra.mxu1 %v1319_v2 }
 0x104   :  { %v184_v6 = vpop.f32.mrb[0].mxu1 }
 0x105   :  { %v185_v7 = vadd.f32 %v184_v6, %v77_v4  ;;  %v186_v8 = vpop.f32.mrb[1].mxu1  ;;  %v1408_v4 = vmov 0.0  }
 0x106   :  { %v187_v9 = vadd.f32 %v186_v8, %v81_v5  ;;  %v188_v10 = vpop.f32.mrb[2].mxu1  ;;  %1159 = vmatprep.subr.bf16.mxu1 %v1408_v4  ;;  %v304_v5 = vld [vmem:[%s1589_s4] sm:$0x3] }
 0x107   :  { %v232_v12 = vmax.f32 %v185_v7, 0.0  ;;  %v189_v13 = vpop.f32.mrb[3].mxu1  ;;  %v309_v6 = vrot.slane %v304_v5, %v76_v1  ;;  %v313_v7 = vrot.slane %v304_v5, %v80_v3  ;;  %v1322_v1 = vld [vmem:[%s1592_s7 + $0x10] sm:$0xff]   ;;  %v1323_v3 = vld [vmem:[%s1592_s7 + $0x18] sm:$0xff]  }
 0x108   :  { %v233_v14 = vmax.f32 %v187_v9, 0.0 }
 0x109   :  { %v236_v18 = vpack.c.bf16 %v232_v12, %v232_v12 }
 0x10a   :  { %v237_v15 = vpack.c.bf16 %v233_v14, %v233_v14 }
 0x10c   :  { %668 = vmatprep.mubr.bf16.mxu0 %v237_v15  ;;  %v1531_v20 = vpop.f32.mrb[4].mxu1 }
 0x10d   :  { %669 = vmatmul.mubr.bf16.vlgmr.msra.gmra.mrb[0].mxu0 %v236_v18  ;;  %v227_v21 = vpop.f32.mrb[5].mxu1  ;;  %v226_v56 = vadd.f32 %v1531_v20, %v85_v53  ;;  %v1325_v20 = vld [vmem:[%s1592_s7 + $0x28] sm:$0xff]  }
 0x10e   :  { %678 = vmatpush1.bf16.msra.mxu0 %v1256_v16  ;;  %v228_v23 = vadd.f32 %v227_v21, %v89_v17  ;;  %v229_v24 = vpop.f32.mrb[6].mxu1  ;;  %v1320_v17 = vld [vmem:[%s1592_s7] sm:$0xff]   ;;  %v1326_v21 = vld [vmem:[%s1592_s7 + $0x30] sm:$0xff]  }
 0x10f   :  { %679 = vmatprep.subr.bf16.mxu0 %v1261_v19  ;;  %v230_v26 = vpop.f32.mrb[7].mxu1  ;;  %v234_v59 = vmax.f32 %v226_v56, 0.0  ;;  %v1324_v19 = vld [vmem:[%s1592_s7 + $0x20] sm:$0xff]  }
 0x110   :  { %v235_v27 = vmax.f32 %v228_v23, 0.0  ;;  %v1102_v24 = vld [vmem:[%s1591_s6] ss:$0 sm:$0xff] }
 0x111   :  { %v238_v60 = vpack.c.bf16 %v234_v59, %v234_v59 }
 0x112   :  { %680 = vmatpush1.bf16.msra.mxu0 %v1259_v22  ;;  %v239_v29 = vpack.c.bf16 %v235_v27, %v235_v27  ;;  %v1327_v22 = vld [vmem:[%s1592_s7 + $0x38] sm:$0xff]   ;;  %s1410_s7 = smov [#allocation7]  }
 0x113   :  { %681 = vmatprep.subr.bf16.mxu0 %v1264_v25  ;;  %s1018_s29 = sshll.u32 %s1410_s7, 4  ;;  %s1019_s29 = int_to_ptr.vmem [resolvable:$true] %s1018_s29 }
 0x114   :  { %709 = vmatprep.mubr.bf16.mxu0 %v239_v29  ;;  %s1372_s6 = scalar_lea.vmem %s1019_s29, 128  ;;  %p1377_p3 = scmp.lt.s32.totalorder %s1019_s29, %s1019_s29 }
 0x115   :  { %p1373_p2 = scmp.ne.s32.totalorder %s1019_s29, %s1372_s6  ;;  %p1378_p4 = scmp.lt.s32.totalorder %s1372_s6, %s1372_s6 }
 0x116   :  { %682 = vmatpush1.bf16.msra.mxu0 %v1262_v28 }
 0x117   :  { %683 = vmatprep.subr.bf16.mxu0 %v1267_v30  ;;  %p1379_p5 = por %p1378_p4, %p1377_p3 }
 0x119   :  { %p1380_p6 = pnand %p1379_p5, %p1373_p2 }
 0x11a   :  { %684 = vmatpush1.bf16.msra.mxu0 %v1265_v31 }
 0x11b   :  { %685 = vmatprep.subr.bf16.mxu0 %v1270_v32  ;;  %v1119_v32 = vld [vmem:[%s1593_s8] ss:$0 sm:$0xff] }
 0x11e   :  { %686 = vmatpush1.bf16.msra.mxu0 %v1268_v33 }
 0x11f   :  { %687 = vmatprep.subr.bf16.mxu0 %v1273_v34 }
 0x122   :  { %688 = vmatpush1.bf16.msra.mxu0 %v1271_v35 }
 0x123   :  { %689 = vmatprep.subr.bf16.mxu0 %v1276_v36 }
 0x126   :  { %690 = vmatpush1.bf16.msra.mxu0 %v1274_v37 }
 0x127   :  { %691 = vmatprep.subr.bf16.mxu0 %v1279_v38 }
 0x12a   :  { %692 = vmatpush1.bf16.msra.mxu0 %v1277_v39 }
 0x12b   :  { %693 = vmatprep.subr.bf16.mxu0 %v1282_v40 }
 0x12e   :  { %694 = vmatpush1.bf16.msra.mxu0 %v1280_v41 }
 0x12f   :  { %695 = vmatprep.subr.bf16.mxu0 %v1285_v42 }
 0x132   :  { %696 = vmatpush1.bf16.msra.mxu0 %v1283_v43 }
 0x133   :  { %697 = vmatprep.subr.bf16.mxu0 %v1288_v44 }
 0x136   :  { %698 = vmatpush1.bf16.msra.mxu0 %v1286_v45 }
 0x137   :  { %699 = vmatprep.subr.bf16.mxu0 %v1291_v46 }
 0x13a   :  { %700 = vmatpush1.bf16.msra.mxu0 %v1289_v47 }
 0x13b   :  { %701 = vmatprep.subr.bf16.mxu0 %v1294_v48 }
 0x13e   :  { %702 = vmatpush1.bf16.msra.mxu0 %v1292_v49 }
 0x13f   :  { %703 = vmatprep.subr.bf16.mxu0 %v1297_v51 }
 0x142   :  { %704 = vmatpush1.bf16.msra.mxu0 %v1295_v52 }
 0x143   :  { %705 = vmatprep.subr.bf16.mxu0 %v1300_v54 }
 0x146   :  { %706 = vmatpush1.bf16.msra.mxu0 %v1298_v55 }
 0x147   :  { %707 = vmatprep.subr.bf16.mxu0 %v1303_v57 }
 0x14a   :  { %708 = vmatpush1.bf16.msra.mxu0 %v1301_v58 }
 0x14d   :  { %710 = vmatmul.mubr.bf16.vlgmr.msra.gmra.mrb[0].mxu0 %v238_v60 }
 0x220   :  { %v711_v8 = vpop.f32.mrb[0].mxu0 }
 0x221   :  { %v1179_v9 = vadd.f32 %v711_v8, %v309_v6  ;;  %v713_v10 = vpop.f32.mrb[1].mxu0 }
 0x222   :  { %v1180_v11 = vadd.f32 %v713_v10, %v313_v7  ;;  %v715_v12 = vpop.f32.mrb[2].mxu0 }
 0x223   :  { %v718_v13 = vmax.f32 %v1179_v9, 0.0  ;;  %v716_v14 = vpop.f32.mrb[3].mxu0 }
 0x224   :  { %v719_v15 = vmax.f32 %v1180_v11, 0.0 }
 0x225   :  { %v720_v18 = vpack.c.bf16 %v718_v13, %v718_v13 }
 0x226   :  { %v721_v16 = vpack.c.bf16 %v719_v15, %v719_v15 }
 0x228   :  { %889 = vmatprep.mubr.bf16.mxu1 %v721_v16 }
 0x229   :  { %890 = vmatmul.mubr.bf16.vlgmr.msra.gmra.mrb[8].mxu1 %v720_v18 }
 0x22a   :  { %1160 = vmatpush3.bf16.msra.mxu1 %v1320_v17  ;;  %1175 = vmatprep.mubr.msk.bf16.mxu1 %vm1409_vm3, %v1408_v4 }
 0x22b   :  { %1161 = vmatprep.subr.bf16.mxu1 %v1408_v4 }
 0x22e   :  { %1162 = vmatpush3.bf16.msra.mxu1 %v1321_v0 }
 0x22f   :  { %1163 = vmatprep.subr.bf16.mxu1 %v1408_v4 }
 0x232   :  { %1164 = vmatpush3.bf16.msra.mxu1 %v1322_v1 }
 0x233   :  { %1165 = vmatprep.subr.bf16.mxu1 %v1408_v4 }
 0x236   :  { %1166 = vmatpush3.bf16.msra.mxu1 %v1323_v3 }
 0x237   :  { %1167 = vmatprep.subr.bf16.mxu1 %v1408_v4 }
 0x23a   :  { %1168 = vmatpush3.bf16.msra.mxu1 %v1324_v19 }
 0x23b   :  { %1169 = vmatprep.subr.bf16.mxu1 %v1408_v4 }
 0x23e   :  { %1170 = vmatpush3.bf16.msra.mxu1 %v1325_v20 }
 0x23f   :  { %1171 = vmatprep.subr.bf16.mxu1 %v1408_v4 }
 0x242   :  { %1172 = vmatpush3.bf16.msra.mxu1 %v1326_v21 }
 0x243   :  { %1173 = vmatprep.subr.bf16.mxu1 %v1408_v4 }
 0x246   :  { %1174 = vmatpush3.bf16.msra.mxu1 %v1327_v22 }
 0x2fc   :  { %v1144_v23 = vpop.f32.mrb[8].mxu1 }
 0x2fd   :  { %v1145_v25 = vpop.f32.mrb[9].mxu1 }
 0x2fe   :  { %v1146_v26 = vadd.f32 %v1145_v25, %v1144_v23  ;;  %v1147_v27 = vpop.f32.mrb[10].mxu1 }
 0x2ff   :  { %v1148_v28 = vpop.f32.mrb[11].mxu1 }
 0x300   :  { %v892_v29 = vadd.f32 %v1146_v26, %v1102_v24 }
 0x302   :  { %v897_v30 = vmax.f32 %v892_v29, 0.0 }
 0x304   :  { %v898_v31 = vpack.c.bf16 %v897_v30, %v897_v30 }
 0x306   :  { %1176 = vmatmul.mubr.bf16.vlgmr.msra.gmra.mrb[12].mxu1 %v898_v31 }
 0x3d9   :  { %v1004_v33 = vpop.f32.mrb[12].mxu1 }
 0x3da   :  { %v1005_v34 = vadd.f32 %v1119_v32, %v1004_v33  ;;  %v1177_v35 = vpop.f32.mrb[13].mxu1 }
 0x3db   :  { %v1007_v36 = vpop.f32.mrb[14].mxu1 }
 0x3dc   :  { %v1178_v37 = vpop.f32.mrb[15].mxu1  ;;  %1011 = vst.msk [vmem:[#allocation7] sm:$0xff] %vm1010_vm4, %v1005_v34 }
 0x3dd   :  { %1383 = shalt.err (!%p1380_p6)
}
 0x3de   :  { %s1384_s8 = scalar_lea.hbm %s1594_s9, 128 }
 0x3df   :  { %p1385_p7 = scmp.ne.s32.totalorder %s1594_s9, %s1384_s8  ;;  %p1388_p8 = scmp.lt.u32.totalorder %s1384_s8, %s1594_s9 }
 0x3e1   :  { %p1390_p9 = pnand %p1388_p8, %p1385_p7 }
 0x3e3   :  { %1393 = shalt.err (!%p1390_p9)
}
 0x3e4   :  { %1021 = dma.vmem_to_hbm [thread:$0]  %s1019_s29, 128, %s1594_s9, [#allocation4]  }
 0x3e5   :  { %1398 = dma.done.wait [#allocation4], 128  }
 0x3e6   :  { %1399 = vsyncadd [#allocation4], 4294967168 }
 0x3e7   :  { %1025 = vsyncpa [#allocation3], 1 }
 0x3e8   :  { %1026 = vsyncpa [#allocation6], 1 }
 0x3e9   :  { %1027 = vsyncpa [#allocation4], 1 }

</bundles_post_ra>
